<compile_context>
chip_gen: v7x
topology: tpu7x:2x2x1
jax: 0.10.0
libtpu: 0.0.40
codegen_flags: <defaults>
</compile_context>

<pallas_src>
import jax
import jax.numpy as jnp
from jax.experimental import pallas as pl
from jax.experimental.pallas import tpu as pltpu

V_DIM = 1408     # self.v_dim  (fixed by the module)
D_V = 50         # self.d_v    (Conv1d output channels)
D_V_PAD = 128    # lane-dense padded output width (multiple of 128)


def _round_up(x, m):
    return (x + m - 1) // m * m


def _choose_tt(T, B):
    """Row tile along T.

    Large tiles amortize the ~0.35 us per-grid-step overhead (the op is purely
    HBM-bound); cap at 1024 rows (~11.5 MiB of double-buffered f32 input at
    V_DIM=1408), well under every generation's VMEM.  When B == 1, cap so the
    grid has >= 2 steps along T and v7x's two TensorCores both get work; with
    B >= 2 the batch grid axis already provides that parallelism.
    """
    if T <= 16:
        return T                      # full-extent block: legal for any T
    cap = 1024                        # multiple of 256 (fills v6e/v7x MXU rows)
    if B == 1:
        cap = max(16, min(cap, _round_up(pl.cdiv(T, 2), 16)))
    if _round_up(T, 16) <= cap:
        return T                      # single full-extent tile along T
    return cap                        # multiple of 16 (bf16 sublane packing)


def conv1x1_kernel(x_ref, w_ref, o_ref):
    # x_ref: (TT, V_DIM) f32 tile: TT time steps of one batch element.
    # w_ref: (V_DIM, D_V_PAD) bf16, VMEM-resident across the whole grid.
    # o_ref: (TT, D_V_PAD) bf16 lane-dense output tile, written at
    #        rows [t_tile] and lane-block [b] of the [T, B*128] output slab.
    x = x_ref[...].astype(jnp.bfloat16)      # cast in-kernel: no extra HBM pass
    o_ref[...] = jnp.dot(
        x, w_ref[...], preferred_element_type=jnp.float32
    ).astype(o_ref.dtype)


def visual_forward(x_vid, conv_w):
    """Pallas forward for `Visual` up to the Conformer input.

    x_vid:  [B, T, V_DIM] float32
    conv_w: [D_V, V_DIM]  float32 (Conv1d weight with kernel_size=1 squeezed)

    Returns proj_x_v: [T, B, D_V] bfloat16 (the tensor fed to the Conformer).
    """
    B, T, v_dim = x_vid.shape
    assert v_dim == V_DIM and conv_w.shape == (D_V, V_DIM)

    # Tiny weight prep (negligible traffic): transpose, zero-pad to 128 lanes,
    # cast to bf16.  Columns 50..127 stay exactly zero in the output.
    w_pad = jnp.zeros((V_DIM, D_V_PAD), jnp.bfloat16)
    w_pad = w_pad.at[:, :D_V].set(jnp.transpose(conv_w).astype(jnp.bfloat16))

    TT = _choose_tt(T, B)
    grid = (pl.cdiv(T, TT), B)

    cost = pl.CostEstimate(
        flops=2 * B * T * V_DIM * D_V,                 # useful columns only
        transcendentals=0,
        bytes_accessed=(B * T * V_DIM * 4              # f32 input read
                        + V_DIM * D_V_PAD * 2          # bf16 resident weight
                        + T * B * D_V_PAD * 2),        # bf16 padded output write
    )

    out = pl.pallas_call(
        conv1x1_kernel,
        out_shape=jax.ShapeDtypeStruct((T, B * D_V_PAD), jnp.bfloat16),
        grid=grid,
        in_specs=[
            # one batch element (squeezed), TT time steps, all 1408 channels
            pl.BlockSpec((None, TT, V_DIM), lambda t, b: (b, t, 0)),
            # resident weight tile (same block index every step -> single DMA)
            pl.BlockSpec((V_DIM, D_V_PAD), lambda t, b: (0, 0)),
        ],
        # permute(2,0,1) fused into the output layout: rows = T, lane block = b
        out_specs=pl.BlockSpec((TT, D_V_PAD), lambda t, b: (t, b)),
        compiler_params=pltpu.CompilerParams(
            dimension_semantics=("parallel", "parallel"),  # v7x: 2 TensorCores
        ),
        cost_estimate=cost,
    )(x_vid, w_pad)

    # [T, B*128] -> [T, B, 128]: contiguous minor-dim split, no data movement.
    proj_padded = out.reshape(T, B, D_V_PAD)

    # TODO(synk): Conformer(input_dim=50, encoder_dim=512, num_encoder_layers=3)
    # (self.x_visual) has no definition in this spec and is not implemented.
    # Downstream should consume `proj_padded` directly (zero-padded input rows
    # in its first projection) instead of this narrow 50-column slice.
    proj_x_v = proj_padded[:, :, :D_V]
    return proj_x_v


def reference_forward(x_vid, conv_w):
    x_t = jnp.swapaxes(x_vid, 1, 2)                   # [B, V_DIM, T]
    visual = jnp.einsum('oc,bct->bot', conv_w, x_t)   # Conv1d, kernel=1, no bias
    return jnp.transpose(visual, (2, 0, 1))           # [T, B, D_V]


if __name__ == "__main__":
    key = jax.random.PRNGKey(0)
    k_x, k_w = jax.random.split(key)

    B, T = 2, 8   # small batch / sequence; V_DIM=1408, D_V=50 are module constants
    x_vid = jax.random.normal(k_x, (B, T, V_DIM), dtype=jnp.float32)

    # nn.Conv1d default init scale: U(-1/sqrt(fan_in), 1/sqrt(fan_in))
    bound = 1.0 / (V_DIM ** 0.5)
    conv_w = jax.random.uniform(k_w, (D_V, V_DIM), jnp.float32, -bound, bound)

    out = jax.jit(visual_forward)(x_vid, conv_w)
    out = jax.block_until_ready(out)

    # Reference on the same bf16-rounded inputs the kernel consumes (kernel also
    # emits a bf16 output, hence the slightly looser tolerance).
    ref = reference_forward(
        x_vid.astype(jnp.bfloat16).astype(jnp.float32),
        conv_w.astype(jnp.bfloat16).astype(jnp.float32),
    )
    out_f32 = out.astype(jnp.float32)
    assert out.shape == (T, B, D_V)
    assert jnp.allclose(out_f32, ref, atol=2e-2, rtol=2e-2), float(
        jnp.max(jnp.abs(out_f32 - ref)))

    print("KERNEL_OK")
</pallas_src>

<mosaic_0001>
module attributes {stable_mosaic.version = 11 : i64} {
  func.func @conv1x1_kernel(%arg0: i32, %arg1: i32, %arg2: memref<1x8x1408xf32, #tpu.memory_space<vmem>>, %arg3: memref<1408x128xbf16, #tpu.memory_space<vmem>>, %arg4: memref<8x128xbf16, #tpu.memory_space<vmem>>) attributes {dimension_semantics = [#tpu.dimension_semantics<parallel>, #tpu.dimension_semantics<parallel>], iteration_bounds = array<i64: 1, 2>, scalar_prefetch = 0 : i64, scratch_operands = 0 : i64, tpu.core_type = #tpu.core_type<tc>, window_params = [{transform_indices = @transform_0, window_bounds = array<i64: 1, 8, 1408>}, {pipeline_mode = #tpu.pipeline_mode<synchronous>, transform_indices = @transform_1, window_bounds = array<i64: 1408, 128>}, {transform_indices = @transform_2, window_bounds = array<i64: 8, 128>}]} {
    %c0 = arith.constant 0 : index
    %c0_0 = arith.constant 0 : index
    %c0_1 = arith.constant 0 : index
    %0 = vector.load %arg2[%c0, %c0_0, %c0_1] : memref<1x8x1408xf32, #tpu.memory_space<vmem>>, vector<1x8x1408xf32>
    %1 = vector.shape_cast %0 : vector<1x8x1408xf32> to vector<8x1408xf32>
    %2 = arith.truncf %1 : vector<8x1408xf32> to vector<8x1408xbf16>
    %c0_2 = arith.constant 0 : index
    %c0_3 = arith.constant 0 : index
    %3 = vector.load %arg3[%c0_2, %c0_3] : memref<1408x128xbf16, #tpu.memory_space<vmem>>, vector<1408x128xbf16>
    %cst = arith.constant dense<0.000000e+00> : vector<8x128xf32>
    %4 = tpu.matmul %2, %3, %cst {dimension_numbers = #tpu.dot_dimension_numbers<[1], [0], [0], [1], [0, 0, 1, 1], [], []>} : vector<8x1408xbf16>, vector<1408x128xbf16>, vector<8x128xf32> -> vector<8x128xf32>
    %5 = arith.truncf %4 : vector<8x128xf32> to vector<8x128xbf16>
    %c0_4 = arith.constant 0 : index
    %c0_5 = arith.constant 0 : index
    %6 = vector.load %arg4[%c0_4, %c0_5] : memref<8x128xbf16, #tpu.memory_space<vmem>>, vector<8x128xbf16>
    tpu.vector_store %arg4[%c0_4, %c0_5], %5 {strides = array<i32>} : memref<8x128xbf16, #tpu.memory_space<vmem>>, vector<8x128xbf16>,
    return
  }
  func.func @transform_0(%arg0: i32, %arg1: i32) -> (i32, i32, i32) {
    %c0_i32 = arith.constant 0 : i32
    %c0_i32_0 = arith.constant 0 : i32
    return %arg1, %arg0, %c0_i32 : i32, i32, i32
  }
  func.func @transform_1(%arg0: i32, %arg1: i32) -> (i32, i32) {
    %c0_i32 = arith.constant 0 : i32
    %c0_i32_0 = arith.constant 0 : i32
    %c0_i32_1 = arith.constant 0 : i32
    return %c0_i32, %c0_i32_0 : i32, i32
  }
  func.func @transform_2(%arg0: i32, %arg1: i32) -> (i32, i32) {
    %c0_i32 = arith.constant 0 : i32
    return %arg0, %arg1 : i32, i32
  }
}

</mosaic_0001>

<bundles_post_ra>
// kernel: visual_forward.1
= control target key start
LH: loop header
LB: loop body
LE: loop exit
PB: predicated region body
PF: predicated region fallthrough
CT: control target
= control target key end

     0   :  { %s1625_s9 = smov 0   ;;  %s1627_s10 = smov 0   ;;  %s1943_s0 = inlined_call_operand.vmem [shape: f32[2,8,1408], index: 0, kind: input, shape index: {}]   ;;  %s1944_s1 = inlined_call_operand.vmem [shape: bf16[1408,128], index: 1, kind: input, shape index: {}]   ;;  %s1945_s2 = inlined_call_operand.vmem [shape: bf16[8,256], index: 2, kind: output, shape index: {}]  }
   0x1   :  { %s1629_s11 = smov 0  }
   0x2 LB: > { %s21_s12 = sadd.s32 1, %s1602_s10  ;;  %p1237_p0 = scmp.ge.s32.totalorder %s1606_s11, 1  ;;  %s1606_s11 = sphi %s1629_s11, %s12_s11   ;;  %s1602_s10 = sphi %s1627_s10, %s1947_s10   ;;  %s1598_s9 = sphi %s1625_s9, %s1946_s9  }
   0x3   : > { %p22_p1 = scmp.ge.s32.totalorder %s21_s12, 2  ;;  %p132_p2 = scmp.lt.s32.totalorder %s1606_s11, 3 }
   0x5   : > { %s1949_s12 = smov (%p22_p1, %s21_s12), 0  ;;  %p133_p3 = pnand %p1237_p0, %p132_p2 }
   0x6   : > { %v1496_v0 = vld [vmem:[%s1944_s1 + $0x40] sm:$0xff] (!%p133_p3)   ;;  %v1500_v4 = vld [vmem:[%s1944_s1 + $0x48] sm:$0xff] (!%p133_p3)   ;;  %v1504_v8 = vld [vmem:[%s1944_s1 + $0x50] sm:$0xff] (!%p133_p3)   ;;  %p161_p4 = scmp.lt.s32.totalorder (!%p133_p3), %s1598_s9, 1  ;;  %vm1609_vm0 = vmmov (!%p133_p3), 0  }
   0x7   : > { %136 = sbr.rel (%p133_p3) target bundleno = 326 (0x146), region = 28  ;;  %v1497_v1 = vld [vmem:[%s1944_s1 + $0xc0] sm:$0xff] (!%p133_p3)   ;;  %1330 = vmatprep.subr.bf16.mxu0 (!%p133_p3), %v1496_v0  ;;  %v1501_v5 = vld [vmem:[%s1944_s1 + $0xc8] sm:$0xff] (!%p133_p3)   ;;  %v1505_v9 = vld [vmem:[%s1944_s1 + $0xd0] sm:$0xff] (!%p133_p3)  }
   0x8   : > { %v1498_v2 = vld [vmem:[%s1944_s1] sm:$0xff] (!%p133_p3)   ;;  %1352 = vmatprep.subr.bf16.mxu1 (!%p133_p3), %v1497_v1  ;;  %v1502_v6 = vld [vmem:[%s1944_s1 + $0x8] sm:$0xff] (!%p133_p3)   ;;  %v1506_v10 = vld [vmem:[%s1944_s1 + $0x10] sm:$0xff] (!%p133_p3)  }
   0x9   : > { %v1499_v3 = vld [vmem:[%s1944_s1 + $0x80] sm:$0xff] (!%p133_p3)   ;;  %1331 = vmatpush3.bf16.msra.mxu0 (!%p133_p3), %v1498_v2  ;;  %v1503_v7 = vld [vmem:[%s1944_s1 + $0x88] sm:$0xff] (!%p133_p3)   ;;  %v1507_v11 = vld [vmem:[%s1944_s1 + $0x90] sm:$0xff] (!%p133_p3)  }
   0xa   : > { %1353 = vmatpush3.bf16.msra.mxu1 (!%p133_p3), %v1499_v3  ;;  %1332 = vmatprep.subr.bf16.mxu0 (!%p133_p3), %v1500_v4  ;;  %v1508_v12 = vld [vmem:[%s1944_s1 + $0x58] sm:$0xff] (!%p133_p3)   ;;  %v1512_v16 = vld [vmem:[%s1944_s1 + $0x60] sm:$0xff] (!%p133_p3)   ;;  %v1516_v20 = vld [vmem:[%s1944_s1 + $0x68] sm:$0xff] (!%p133_p3)  }
   0xb   : > { %1354 = vmatprep.subr.bf16.mxu1 (!%p133_p3), %v1501_v5  ;;  %v1509_v13 = vld [vmem:[%s1944_s1 + $0xd8] sm:$0xff] (!%p133_p3)   ;;  %v1513_v17 = vld [vmem:[%s1944_s1 + $0xe0] sm:$0xff] (!%p133_p3)   ;;  %v1517_v21 = vld [vmem:[%s1944_s1 + $0xe8] sm:$0xff] (!%p133_p3)  }
   0xc   : > { %v1510_v14 = vld [vmem:[%s1944_s1 + $0x18] sm:$0xff] (!%p133_p3)   ;;  %v1514_v18 = vld [vmem:[%s1944_s1 + $0x20] sm:$0xff] (!%p133_p3)   ;;  %v1518_v22 = vld [vmem:[%s1944_s1 + $0x28] sm:$0xff] (!%p133_p3)  }
   0xd   : > { %1333 = vmatpush3.bf16.msra.mxu0 (!%p133_p3), %v1502_v6  ;;  %v1511_v15 = vld [vmem:[%s1944_s1 + $0x98] sm:$0xff] (!%p133_p3)   ;;  %v1515_v19 = vld [vmem:[%s1944_s1 + $0xa0] sm:$0xff] (!%p133_p3)   ;;  %v1519_v23 = vld [vmem:[%s1944_s1 + $0xa8] sm:$0xff] (!%p133_p3)  }
   0xe   : > { %1355 = vmatpush3.bf16.msra.mxu1 %v1503_v7  ;;  %1334 = vmatprep.subr.bf16.mxu0 %v1504_v8  ;;  %s1951_s9 = smov (!%p161_p4, %s1598_s9), 1  ;;  %v1520_v24 = vld [vmem:[%s1944_s1 + $0x70] sm:$0xff]   ;;  %v1524_v28 = vld [vmem:[%s1944_s1 + $0x78] sm:$0xff]   ;;  %v1528_v40 = vld [vmem:[%s1944_s1 + $0x140] sm:$0xff]  }
   0xf   : > { %1356 = vmatprep.subr.bf16.mxu1 %v1505_v9  ;;  %v1521_v25 = vld [vmem:[%s1944_s1 + $0xf0] sm:$0xff]   ;;  %s1469_s17 = smul.u32 88, %s1951_s9  ;;  %v1525_v29 = vld [vmem:[%s1944_s1 + $0xf8] sm:$0xff]   ;;  %v1529_v41 = vld [vmem:[%s1944_s1 + $0x100] sm:$0xff]  }
  0x10   : > { %v1522_v26 = vld [vmem:[%s1944_s1 + $0x30] sm:$0xff]   ;;  %v1526_v30 = vld [vmem:[%s1944_s1 + $0x38] sm:$0xff]   ;;  %v1530_v42 = vld [vmem:[%s1944_s1 + $0x1c0] sm:$0xff]  }
  0x11   : > { %1335 = vmatpush3.bf16.msra.mxu0 %v1506_v10  ;;  %v1523_v27 = vld [vmem:[%s1944_s1 + $0xb0] sm:$0xff]   ;;  %s1743_s28 = scalar_lea.vmem %s1943_s0, %s1469_s17  ;;  %v1527_v31 = vld [vmem:[%s1944_s1 + $0xb8] sm:$0xff]   ;;  %v1531_v43 = vld [vmem:[%s1944_s1 + $0x180] sm:$0xff]  }
  0x12   : > { %1357 = vmatpush3.bf16.msra.mxu1 %v1507_v11  ;;  %1336 = vmatprep.subr.bf16.mxu0 %v1508_v12  ;;  %v180_v32 = vld [vmem:[%s1743_s28 + $0x8] sm:$0xff]  ;;  %v182_v33 = vld [vmem:[%s1743_s28 + $0x18] sm:$0xff]  ;;  %v179_v34 = vld [vmem:[%s1743_s28] sm:$0xff] }
  0x13   : > { %1358 = vmatprep.subr.bf16.mxu1 %v1509_v13  ;;  %v191_v35 = vpack.c.bf16 %v180_v32, %v180_v32  ;;  %v193_v36 = vpack.c.bf16 %v182_v33, %v182_v33  ;;  %v190_v37 = vpack.c.bf16 %v179_v34, %v179_v34  ;;  %v181_v38 = vld [vmem:[%s1743_s28 + $0x10] sm:$0xff]  ;;  %v1532_v44 = vld [vmem:[%s1944_s1 + $0x148] sm:$0xff]   ;;  %v1540_v52 = vld [vmem:[%s1944_s1 + $0x158] sm:$0xff]  }
  0x14   : > { %v192_v39 = vpack.c.bf16 %v181_v38, %v181_v38  ;;  %v1533_v45 = vld [vmem:[%s1944_s1 + $0x108] sm:$0xff]   ;;  %v1536_v48 = vld [vmem:[%s1944_s1 + $0x150] sm:$0xff]   ;;  %v1541_v53 = vld [vmem:[%s1944_s1 + $0x118] sm:$0xff]  }
  0x15   : > { %1337 = vmatpush3.bf16.msra.mxu0 %v1510_v14  ;;  %937 = vmatprep.mubr.bf16.mxu0 %v191_v35  ;;  %v1534_v46 = vld [vmem:[%s1944_s1 + $0x1c8] sm:$0xff]   ;;  %v1537_v49 = vld [vmem:[%s1944_s1 + $0x110] sm:$0xff]   ;;  %v1542_v54 = vld [vmem:[%s1944_s1 + $0x1d8] sm:$0xff]  }
  0x16   : > { %1359 = vmatpush3.bf16.msra.mxu1 %v1511_v15  ;;  %1338 = vmatprep.subr.bf16.mxu0 %v1512_v16  ;;  %v1535_v47 = vld [vmem:[%s1944_s1 + $0x188] sm:$0xff]   ;;  %v1538_v50 = vld [vmem:[%s1944_s1 + $0x1d0] sm:$0xff]   ;;  %v1543_v55 = vld [vmem:[%s1944_s1 + $0x198] sm:$0xff]  }
  0x17   : > { %1360 = vmatprep.subr.bf16.mxu1 %v1513_v17  ;;  %977 = vmatprep.mubr.bf16.mxu1 %v193_v36  ;;  %v1539_v51 = vld [vmem:[%s1944_s1 + $0x190] sm:$0xff]   ;;  %v1544_v56 = vld [vmem:[%s1944_s1 + $0x160] sm:$0xff]   ;;  %v1548_v60 = vld [vmem:[%s1944_s1 + $0x168] sm:$0xff]   ;;  %v1608_v17 = vmov 0.0  }
  0x18   : > { %v1545_v57 = vld [vmem:[%s1944_s1 + $0x120] sm:$0xff]   ;;  %v1549_v61 = vld [vmem:[%s1944_s1 + $0x128] sm:$0xff]   ;;  %v1552_v0 = vld [vmem:[%s1944_s1 + $0x170] sm:$0xff]  }
  0x19   : > { %1339 = vmatpush3.bf16.msra.mxu0 %v1514_v18  ;;  %v1546_v58 = vld [vmem:[%s1944_s1 + $0x1e0] sm:$0xff]   ;;  %v1550_v62 = vld [vmem:[%s1944_s1 + $0x1e8] sm:$0xff]   ;;  %v1553_v1 = vld [vmem:[%s1944_s1 + $0x130] sm:$0xff]  }
  0x1a   : > { %1361 = vmatpush3.bf16.msra.mxu1 %v1515_v19  ;;  %1340 = vmatprep.subr.bf16.mxu0 %v1516_v20  ;;  %v1547_v59 = vld [vmem:[%s1944_s1 + $0x1a0] sm:$0xff]   ;;  %v1551_v63 = vld [vmem:[%s1944_s1 + $0x1a8] sm:$0xff]   ;;  %v1554_v2 = vld [vmem:[%s1944_s1 + $0x1f0] sm:$0xff]  }
  0x1b   : > { %1362 = vmatprep.subr.bf16.mxu1 %v1517_v21  ;;  %v1555_v3 = vld [vmem:[%s1944_s1 + $0x1b0] sm:$0xff]   ;;  %v1556_v4 = vld [vmem:[%s1944_s1 + $0x178] sm:$0xff]   ;;  %v184_v7 = vld [vmem:[%s1743_s28 + $0x28] sm:$0xff] }
  0x1c   : > { %v1557_v5 = vld [vmem:[%s1944_s1 + $0x138] sm:$0xff]   ;;  %v195_v8 = vpack.c.bf16 %v184_v7, %v184_v7  ;;  %v183_v10 = vld [vmem:[%s1743_s28 + $0x20] sm:$0xff]  ;;  %v185_v16 = vld [vmem:[%s1743_s28 + $0x30] sm:$0xff] }
  0x1d   : > { %1341 = vmatpush3.bf16.msra.mxu0 %v1518_v22  ;;  %v1558_v6 = vld [vmem:[%s1944_s1 + $0x1f8] sm:$0xff]   ;;  %v194_v11 = vpack.c.bf16 %v183_v10, %v183_v10  ;;  %v1560_v12 = vld [vmem:[%s1944_s1 + $0x240] sm:$0xff]   ;;  %v196_v18 = vpack.c.bf16 %v185_v16, %v185_v16  ;;  %v1563_v20 = vld [vmem:[%s1944_s1 + $0x248] sm:$0xff]  }
  0x1e   : > { %1363 = vmatpush3.bf16.msra.mxu1 %v1519_v23  ;;  %1342 = vmatprep.subr.bf16.mxu0 %v1520_v24  ;;  %v1559_v9 = vld [vmem:[%s1944_s1 + $0x1b8] sm:$0xff]   ;;  %v1561_v15 = vld [vmem:[%s1944_s1 + $0x200] sm:$0xff]   ;;  %v1564_v21 = vld [vmem:[%s1944_s1 + $0x208] sm:$0xff]  }
  0x1f   : > { %1364 = vmatprep.subr.bf16.mxu1 %v1521_v25  ;;  %v186_v13 = vld [vmem:[%s1743_s28 + $0x38] sm:$0xff]  ;;  %v1562_v19 = vld [vmem:[%s1944_s1 + $0x280] sm:$0xff]   ;;  %v1565_v22 = vld [vmem:[%s1944_s1 + $0x288] sm:$0xff]  }
  0x20   : > { %v197_v14 = vpack.c.bf16 %v186_v13, %v186_v13  ;;  %v1566_v23 = vld [vmem:[%s1944_s1 + $0x250] sm:$0xff]   ;;  %v1574_v32 = vld [vmem:[%s1944_s1 + $0x2a0] sm:$0xff]   ;;  %v1576_v33 = vld [vmem:[%s1944_s1 + $0x228] sm:$0xff]  }
  0x21   : > { %1343 = vmatpush3.bf16.msra.mxu0 %v1522_v26  ;;  %v1567_v24 = vld [vmem:[%s1944_s1 + $0x210] sm:$0xff]   ;;  %v1569_v26 = vld [vmem:[%s1944_s1 + $0x258] sm:$0xff]   ;;  %v1577_v35 = vld [vmem:[%s1944_s1 + $0x2a8] sm:$0xff]  }
  0x22   : > { %1365 = vmatpush3.bf16.msra.mxu1 %v1523_v27  ;;  %1344 = vmatprep.subr.bf16.mxu0 %v1524_v28  ;;  %v1568_v25 = vld [vmem:[%s1944_s1 + $0x290] sm:$0xff]   ;;  %v1570_v27 = vld [vmem:[%s1944_s1 + $0x218] sm:$0xff]   ;;  %v1572_v28 = vld [vmem:[%s1944_s1 + $0x260] sm:$0xff]  }
  0x23   : > { %1366 = vmatprep.subr.bf16.mxu1 %v1525_v29  ;;  %v1571_v29 = vld [vmem:[%s1944_s1 + $0x298] sm:$0xff]   ;;  %v1578_v34 = vld [vmem:[%s1944_s1 + $0x270] sm:$0xff]   ;;  %v188_v36 = vld [vmem:[%s1743_s28 + $0x48] sm:$0xff] }
  0x24   : > { %v199_v38 = vpack.c.bf16 %v188_v36, %v188_v36 }
  0x25   : > { %1345 = vmatpush3.bf16.msra.mxu0 %v1526_v30  ;;  %v1573_v30 = vld [vmem:[%s1944_s1 + $0x220] sm:$0xff]  }
  0x26   : > { %1367 = vmatpush3.bf16.msra.mxu1 %v1527_v31  ;;  %1374 = vmatprep.subr.bf16.mxu0 %v1528_v40  ;;  %v1575_v31 = vld [vmem:[%s1944_s1 + $0x268] sm:$0xff]   ;;  %v1580_v40 = vld [vmem:[%s1944_s1 + $0x2b0] sm:$0xff]  }
  0x27   : > { %1396 = vmatprep.subr.bf16.mxu1 %v1530_v42  ;;  %v187_v42 = vld [vmem:[%s1743_s28 + $0x40] sm:$0xff] }
  0x28   : > { %938 = vmatmul.mubr.bf16.vlgmr.msra.gmra.mrb[0].mxu0 %v190_v37  ;;  %v1579_v37 = vld [vmem:[%s1944_s1 + $0x230] sm:$0xff]  }
  0x29   : > { %978 = vmatmul.mubr.bf16.vlgmr.msra.gmra.mrb[0].mxu1 %v192_v39  ;;  %1375 = vmatpush3.bf16.msra.mxu0 %v1529_v41  ;;  %v1581_v39 = vld [vmem:[%s1944_s1 + $0x278] sm:$0xff]  }
  0x2a   : > { %1397 = vmatpush3.bf16.msra.mxu1 %v1531_v43  ;;  %1376 = vmatprep.subr.bf16.mxu0 %v1532_v44  ;;  %v1582_v41 = vld [vmem:[%s1944_s1 + $0x238] sm:$0xff]   ;;  %v189_v44 = vld [vmem:[%s1743_s28 + $0x50] sm:$0xff]  ;;  %s1239_s28 = sshll.u32 %s1951_s9, 2 }
  0x2b   : > { %1398 = vmatprep.subr.bf16.mxu1 %v1534_v46  ;;  %1017 = vmatprep.mubr.bf16.mxu0 %v195_v8  ;;  %v1583_v43 = vld [vmem:[%s1944_s1 + $0x2b8] sm:$0xff]   ;;  %v200_v46 = vpack.c.bf16 %v189_v44, %v189_v44  ;;  %s177_s4 = scalar_lea.vmem %s1945_s2, %s1239_s28 }
  0x2c   : > { %1057 = vmatprep.mubr.bf16.mxu1 %v197_v14 }
  0x2d   : > { %1377 = vmatpush3.bf16.msra.mxu0 %v1533_v45  ;;  %v198_v45 = vpack.c.bf16 %v187_v42, %v187_v42 }
  0x2e   : > { %1399 = vmatpush3.bf16.msra.mxu1 %v1535_v47  ;;  %1378 = vmatprep.subr.bf16.mxu0 %v1536_v48 }
  0x2f   : > { %1400 = vmatprep.subr.bf16.mxu1 %v1538_v50 }
  0x31   : > { %1379 = vmatpush3.bf16.msra.mxu0 %v1537_v49 }
  0x32   : > { %1401 = vmatpush3.bf16.msra.mxu1 %v1539_v51  ;;  %1380 = vmatprep.subr.bf16.mxu0 %v1540_v52 }
  0x33   : > { %1402 = vmatprep.subr.bf16.mxu1 %v1542_v54 }
  0x35   : > { %1381 = vmatpush3.bf16.msra.mxu0 %v1541_v53 }
  0x36   : > { %1403 = vmatpush3.bf16.msra.mxu1 %v1543_v55  ;;  %1382 = vmatprep.subr.bf16.mxu0 %v1544_v56 }
  0x37   : > { %1404 = vmatprep.subr.bf16.mxu1 %v1546_v58 }
  0x39   : > { %1383 = vmatpush3.bf16.msra.mxu0 %v1545_v57 }
  0x3a   : > { %1405 = vmatpush3.bf16.msra.mxu1 %v1547_v59  ;;  %1384 = vmatprep.subr.bf16.mxu0 %v1548_v60 }
  0x3b   : > { %1406 = vmatprep.subr.bf16.mxu1 %v1550_v62 }
  0x3d   : > { %1385 = vmatpush3.bf16.msra.mxu0 %v1549_v61 }
  0x3e   : > { %1407 = vmatpush3.bf16.msra.mxu1 %v1551_v63  ;;  %1386 = vmatprep.subr.bf16.mxu0 %v1552_v0 }
  0x3f   : > { %1408 = vmatprep.subr.bf16.mxu1 %v1554_v2 }
  0x41   : > { %1387 = vmatpush3.bf16.msra.mxu0 %v1553_v1 }
  0x42   : > { %1409 = vmatpush3.bf16.msra.mxu1 %v1555_v3  ;;  %1388 = vmatprep.subr.bf16.mxu0 %v1556_v4 }
  0x43   : > { %1410 = vmatprep.subr.bf16.mxu1 %v1558_v6 }
  0x45   : > { %1389 = vmatpush3.bf16.msra.mxu0 %v1557_v5 }
  0x46   : > { %1411 = vmatpush3.bf16.msra.mxu1 %v1559_v9  ;;  %1418 = vmatprep.subr.bf16.mxu0 %v1560_v12 }
  0x47   : > { %1449 = vmatprep.subr.bf16.mxu1 %v1608_v17 }
  0x48   : > { %1018 = vmatmul.mubr.bf16.vlgmr.msra.gmra.mrb[4].mxu0 %v194_v11 }
  0x49   : > { %1419 = vmatpush3.bf16.msra.mxu0 %v1561_v15  ;;  %1058 = vmatmul.mubr.bf16.vlgmr.msra.gmra.mrb[4].mxu1 %v196_v18 }
  0x4a   : > { %1450 = vmatpush3.bf16.msra.mxu1 %v1562_v19  ;;  %1420 = vmatprep.subr.bf16.mxu0 %v1563_v20 }
  0x4b   : > { %1451 = vmatprep.subr.bf16.mxu1 %v1608_v17  ;;  %1465 = vmatprep.mubr.msk.bf16.mxu1 %vm1609_vm0, %v1608_v17 }
  0x4c   : > { %1097 = vmatprep.mubr.bf16.mxu0 %v199_v38 }
  0x4d   : > { %1421 = vmatpush3.bf16.msra.mxu0 %v1564_v21 }
  0x4e   : > { %1422 = vmatprep.subr.bf16.mxu0 %v1566_v23  ;;  %1452 = vmatpush3.bf16.msra.mxu1 %v1565_v22 }
  0x4f   : > { %1453 = vmatprep.subr.bf16.mxu1 %v1608_v17 }
  0x51   : > { %1423 = vmatpush3.bf16.msra.mxu0 %v1567_v24 }
  0x52   : > { %1424 = vmatprep.subr.bf16.mxu0 %v1569_v26  ;;  %1454 = vmatpush3.bf16.msra.mxu1 %v1568_v25 }
  0x53   : > { %1455 = vmatprep.subr.bf16.mxu1 %v1608_v17 }
  0x55   : > { %1425 = vmatpush3.bf16.msra.mxu0 %v1570_v27 }
  0x56   : > { %1426 = vmatprep.subr.bf16.mxu0 %v1572_v28  ;;  %1456 = vmatpush3.bf16.msra.mxu1 %v1571_v29 }
  0x57   : > { %1457 = vmatprep.subr.bf16.mxu1 %v1608_v17 }
  0x59   : > { %1427 = vmatpush3.bf16.msra.mxu0 %v1573_v30 }
  0x5a   : > { %1428 = vmatprep.subr.bf16.mxu0 %v1575_v31  ;;  %1458 = vmatpush3.bf16.msra.mxu1 %v1574_v32 }
  0x5b   : > { %1459 = vmatprep.subr.bf16.mxu1 %v1608_v17 }
  0x5d   : > { %1429 = vmatpush3.bf16.msra.mxu0 %v1576_v33 }
  0x5e   : > { %1430 = vmatprep.subr.bf16.mxu0 %v1578_v34  ;;  %1460 = vmatpush3.bf16.msra.mxu1 %v1577_v35 }
  0x5f   : > { %1461 = vmatprep.subr.bf16.mxu1 %v1608_v17 }
  0x61   : > { %1431 = vmatpush3.bf16.msra.mxu0 %v1579_v37 }
  0x62   : > { %1432 = vmatprep.subr.bf16.mxu0 %v1581_v39  ;;  %1462 = vmatpush3.bf16.msra.mxu1 %v1580_v40 }
  0x63   : > { %1463 = vmatprep.subr.bf16.mxu1 %v1608_v17 }
  0x65   : > { %1433 = vmatpush3.bf16.msra.mxu0 %v1582_v41 }
  0x66   : > { %1464 = vmatpush3.bf16.msra.mxu1 %v1583_v43 }
  0x68   : > { %1098 = vmatmul.mubr.bf16.vlgmr.msra.gmra.mrb[8].mxu0 %v198_v45 }
  0x69   : > { %1466 = vmatmul.mubr.bf16.vlgmr.msra.gmra.mrb[8].mxu1 %v200_v46 }
  0xfb   : > { %v1346_v47 = vpop.f32.mrb[0].mxu0 }
  0xfc   : > { %v1368_v48 = vpop.f32.mrb[0].mxu1  ;;  %v1347_v49 = vpop.f32.mrb[1].mxu0 }
  0xfd   : > { %v1369_v50 = vpop.f32.mrb[1].mxu1  ;;  %v1348_v51 = vadd.f32 %v1347_v49, %v1346_v47  ;;  %v1349_v53 = vpop.f32.mrb[2].mxu0 }
  0xfe   : > { %v1370_v52 = vadd.f32 %v1369_v50, %v1368_v48  ;;  %v1371_v54 = vpop.f32.mrb[2].mxu1  ;;  %v1350_v55 = vpop.f32.mrb[3].mxu0 }
  0xff   : > { %v1372_v56 = vpop.f32.mrb[3].mxu1 }
 0x100   : > { %v980_v57 = vadd.f32 %v1370_v52, %v1348_v51 }
 0x11b   : > { %v1390_v58 = vpop.f32.mrb[4].mxu0 }
 0x11c   : > { %v1391_v59 = vpop.f32.mrb[5].mxu0  ;;  %v1412_v62 = vpop.f32.mrb[4].mxu1 }
 0x11d   : > { %v1392_v60 = vadd.f32 %v1391_v59, %v1390_v58  ;;  %v1393_v61 = vpop.f32.mrb[6].mxu0  ;;  %v1413_v0 = vpop.f32.mrb[5].mxu1 }
 0x11e   : > { %v1394_v63 = vpop.f32.mrb[7].mxu0  ;;  %v1414_v2 = vadd.f32 %v1413_v0, %v1412_v62  ;;  %v1415_v3 = vpop.f32.mrb[6].mxu1 }
 0x11f   : > { %v1020_v1 = vadd.f32 %v1392_v60, %v980_v57  ;;  %v1416_v4 = vpop.f32.mrb[7].mxu1 }
 0x121   : > { %v1060_v5 = vadd.f32 %v1414_v2, %v1020_v1 }
 0x13b   : > { %v1434_v6 = vpop.f32.mrb[8].mxu0 }
 0x13c   : > { %v1435_v7 = vpop.f32.mrb[9].mxu0  ;;  %v1139_v10 = vpop.f32.mrb[8].mxu1 }
 0x13d   : > { %v1436_v8 = vadd.f32 %v1435_v7, %v1434_v6  ;;  %v1437_v9 = vpop.f32.mrb[10].mxu0  ;;  %v1467_v12 = vpop.f32.mrb[9].mxu1 }
 0x13e   : > { %v1438_v11 = vpop.f32.mrb[11].mxu0  ;;  %v1142_v14 = vpop.f32.mrb[10].mxu1 }
 0x13f   : > { %v1100_v13 = vadd.f32 %v1436_v8, %v1060_v5  ;;  %v1468_v15 = vpop.f32.mrb[11].mxu1 }
 0x141   : > { %v1140_v16 = vadd.f32 %v1139_v10, %v1100_v13 }
 0x143   : > { %v1145_v17 = vpack.c.bf16 %v1140_v16, %v1140_v16 }
 0x145   : > { %1146 = vst [vmem:[%s177_s4] sm:$0xf] %v1145_v17 }
 0x146 PF: > { %s12_s11 = sadd.s32 1, %s1606_s11   ;;  %s1946_s9 = smov %s1602_s10 }
 0x147   : > { %p9_p5 = scmp.ge.s32.totalorder %s12_s11, 4   ;;  %s1947_s10 = smov %s1949_s12 }
 0x149   :  { %11 = sbr.rel (!%p9_p5) target bundleno = 2 (0x2), region = 58 }

</bundles_post_ra>
